<compile_context>
chip_gen: v7x
topology: tpu7x:2x2x1
jax: 0.10.0
libtpu: 0.0.40
codegen_flags: <defaults>
</compile_context>

<pallas_src>
import functools

import jax
import jax.numpy as jnp
from jax import lax
from jax.experimental import pallas as pl
from jax.experimental.pallas import tpu as pltpu


_SQRT_HALF = 0.7071067811865476


def _erf(z):
    # Abramowitz & Stegun 7.1.26 rational approximation, |err| <= 1.5e-7.
    # exp -> EUP, reciprocal -> EUP (approx) + one Newton step on the VPU.
    a1, a2, a3, a4, a5 = (0.254829592, -0.284496736, 1.421413741,
                          -1.453152027, 1.061405429)
    p = 0.3275911
    az = jnp.abs(z)
    denom = 1.0 + p * az
    r = pl.reciprocal(denom, approx=True)
    t = r * (2.0 - denom * r)            # Newton step: ~2^-24 relative error
    poly = ((((a5 * t + a4) * t + a3) * t + a2) * t + a1) * t
    e = 1.0 - poly * jnp.exp(-az * az)
    return jnp.where(z >= 0.0, e, -e)


def _gelu_exact(x):
    # Matches torch.nn.GELU() default (erf form), not the tanh approximation.
    return 0.5 * x * (1.0 + _erf(x * _SQRT_HALF))


def _conv_pos_enc_kernel(x_ref, w_ref, b_ref, o_ref, *, H, W, k):
    # x_ref: (Bt, H, W, C)  unpadded, channels-last input block
    # w_ref: (k*k, C)       depthwise taps, one lane-dense row per tap
    # b_ref: (1, C)         conv bias
    # o_ref: (Bt, H, W, C)
    pad = k // 2
    Bt, _, _, C = x_ref.shape
    f32 = jnp.float32

    # Loop-invariant values, hoisted out of the per-image loop (JAX does not
    # CSE broadcast/iota inside the loop body).
    taps = [w_ref[t, :].astype(f32) for t in range(k * k)]          # (C,) each
    bias = b_ref[...].astype(f32)                                   # (1, C)
    w_idx = lax.broadcasted_iota(jnp.int32, (W, 1), 0)              # (W, 1)
    col_valid = [(w_idx + dj >= 0) & (w_idx + dj < W)
                 for dj in range(-pad, pad + 1)]                    # (W, 1)

    def body(bi, carry):
        x = x_ref[bi].astype(f32)                                   # (H, W, C)

        # One sublane rotate (XLU) + boundary mask per width offset dj:
        #   z[dj][h, w, :] = x[h, w+dj, :] if 0 <= w+dj < W else 0
        z = []
        for dj in range(-pad, pad + 1):
            if dj == 0:
                z.append(x)
            else:
                rolled = pltpu.roll(x, shift=(-dj) % W, axis=1)
                z.append(jnp.where(col_valid[dj + pad], rolled, 0.0))

        # Depthwise conv: per-di weighted combination of the dj-shifted
        # images, then a free outer-dim (H) shift with zero border rows.
        acc = None
        for di in range(-pad, pad + 1):
            u = None
            for dj in range(-pad, pad + 1):
                term = z[dj + pad] * taps[(di + pad) * k + (dj + pad)]
                u = term if u is None else u + term
            if di > 0:
                u = jnp.concatenate(
                    [u[di:], jnp.zeros((di, W, C), f32)], axis=0)
            elif di < 0:
                u = jnp.concatenate(
                    [jnp.zeros((-di, W, C), f32), u[:H + di]], axis=0)
            acc = u if acc is None else acc + u

        # Fused bias + exact GELU + residual; one store per image.
        o_ref[bi] = (x + _gelu_exact(acc + bias)).astype(o_ref.dtype)
        return carry

    lax.fori_loop(0, Bt, body, 0)


def _pick_block_b(B, bytes_per_img):
    """Largest batch block whose double-buffered (in+out) footprint fits a
    v7x-safe VMEM budget, while keeping enough grid steps for both v7x
    TensorCores and for DMA/compute overlap."""
    per_copy_budget = 16 * 1024 * 1024          # x2 double-buffer = 32 MiB
    bb = max(1, min(B, per_copy_budget // max(1, bytes_per_img)))
    if B >= 2:                                   # >= 2 steps: one per v7x TC
        bb = min(bb, -(-B // 2))
    if B >= 4 and -(-B // 4) * bytes_per_img >= (2 << 20):
        bb = min(bb, -(-B // 4))                 # >= 4 steps if blocks stay big
    return int(bb)


def conv_pos_enc(x, w, b, *, H, W, k=3, block_b=None):
    """DaViT ConvPosEnc forward: x + GELU(depthwise_conv2d(x) + bias).

    x: (B, N, C) with N == H * W
    w: (C, 1, k, k)  torch depthwise Conv2d weight
    b: (C,)          torch Conv2d bias
    """
    B, N, C = x.shape
    assert N == H * W
    assert k % 2 == 1

    # Channels-last spatial view: contiguous reshape, zero data movement.
    x_sp = x.reshape(B, H, W, C)
    # Depthwise taps as lane-dense rows: (C, 1, k, k) -> (k*k, C).
    w_taps = jnp.transpose(w.reshape(C, k * k), (1, 0))
    b_row = b.reshape(1, C)

    itemsize = jnp.dtype(x.dtype).itemsize
    bytes_per_img = 2 * H * W * C * itemsize     # in + out block bytes / image
    if block_b is None:
        block_b = _pick_block_b(B, bytes_per_img)
    grid_b = pl.cdiv(B, block_b)                 # tail block masked by Pallas

    kernel = functools.partial(_conv_pos_enc_kernel, H=H, W=W, k=k)

    out_sp = pl.pallas_call(
        kernel,
        out_shape=jax.ShapeDtypeStruct((B, H, W, C), x.dtype),
        grid_spec=pltpu.PrefetchScalarGridSpec(
            num_scalar_prefetch=0,
            grid=(grid_b,),
            in_specs=[
                pl.BlockSpec((block_b, H, W, C), lambda i: (i, 0, 0, 0)),
                pl.BlockSpec((k * k, C), lambda i: (0, 0)),
                pl.BlockSpec((1, C), lambda i: (0, 0)),
            ],
            out_specs=pl.BlockSpec((block_b, H, W, C),
                                   lambda i: (i, 0, 0, 0)),
        ),
        compiler_params=pltpu.CompilerParams(
            dimension_semantics=("parallel",),
            # 2 x 16 MiB double-buffered (in+out) blocks + headroom; fits
            # v7x's 64 MiB/TC VMEM as well as v5e/v6e's 128 MiB.
            vmem_limit_bytes=48 * 1024 * 1024),
    )(x_sp, w_taps, b_row)

    return out_sp.reshape(B, N, C)


def conv_pos_enc_ref(x, w, b, *, H, W, k=3):
    """Pure-JAX reference mirroring the PyTorch forward (exact GELU)."""
    B, N, C = x.shape
    pad = k // 2
    x_sp = x.reshape(B, H, W, C)
    w_hwio = jnp.transpose(w, (2, 3, 1, 0))          # (k, k, 1, C)
    feat = jax.lax.conv_general_dilated(
        x_sp, w_hwio, window_strides=(1, 1),
        padding=((pad, pad), (pad, pad)),
        dimension_numbers=("NHWC", "HWIO", "NHWC"),
        feature_group_count=C)
    feat = (feat + b).reshape(B, N, C)
    return x + jax.nn.gelu(feat, approximate=False)


if __name__ == "__main__":
    # Small deterministic config consistent with DaViT: dim=128, 8x8 tokens.
    B, H, W, C, k = 2, 8, 8, 128, 3
    N = H * W

    key = jax.random.PRNGKey(0)
    kx, kw, kb = jax.random.split(key, 3)
    x = jax.random.normal(kx, (B, N, C), dtype=jnp.float32)
    # nn.Conv2d(dim, dim, k, 1, k//2, groups=dim) -> W: (C, 1, k, k), b: (C,)
    w = jax.random.normal(kw, (C, 1, k, k), dtype=jnp.float32) * 0.1
    b = jax.random.normal(kb, (C,), dtype=jnp.float32) * 0.05

    out = conv_pos_enc(x, w, b, H=H, W=W, k=k)
    out = jax.block_until_ready(out)

    ref = conv_pos_enc_ref(x, w, b, H=H, W=W, k=k)
    assert out.shape == (B, N, C)
    assert jnp.allclose(out, ref, atol=1e-4, rtol=1e-4), (
        "mismatch vs. pure-JAX reference")

    print("KERNEL_OK")
</pallas_src>

<mosaic_0001>
module attributes {stable_mosaic.version = 11 : i64} {
  func.func @_conv_pos_enc_kernel(%arg0: i32, %arg1: memref<1x8x8x128xf32, #tpu.memory_space<vmem>>, %arg2: memref<9x128xf32, #tpu.memory_space<vmem>>, %arg3: memref<1x128xf32, #tpu.memory_space<vmem>>, %arg4: memref<1x8x8x128xf32, #tpu.memory_space<vmem>>) attributes {dimension_semantics = [#tpu.dimension_semantics<parallel>], iteration_bounds = array<i64: 2>, scalar_prefetch = 0 : i64, scratch_operands = 0 : i64, tpu.core_type = #tpu.core_type<tc>, window_params = [{transform_indices = @transform_0, window_bounds = array<i64: 1, 8, 8, 128>}, {pipeline_mode = #tpu.pipeline_mode<synchronous>, transform_indices = @transform_1, window_bounds = array<i64: 9, 128>}, {pipeline_mode = #tpu.pipeline_mode<synchronous>, transform_indices = @transform_2, window_bounds = array<i64: 1, 128>}, {transform_indices = @transform_3, window_bounds = array<i64: 1, 8, 8, 128>}]} {
    %c0 = arith.constant 0 : index
    %c0_0 = arith.constant 0 : index
    %0 = vector.load %arg2[%c0, %c0_0] : memref<9x128xf32, #tpu.memory_space<vmem>>, vector<1x128xf32>
    %1 = vector.shape_cast %0 : vector<1x128xf32> to vector<128xf32>
    %c1 = arith.constant 1 : index
    %c0_1 = arith.constant 0 : index
    %2 = vector.load %arg2[%c1, %c0_1] : memref<9x128xf32, #tpu.memory_space<vmem>>, vector<1x128xf32>
    %3 = vector.shape_cast %2 : vector<1x128xf32> to vector<128xf32>
    %c2 = arith.constant 2 : index
    %c0_2 = arith.constant 0 : index
    %4 = vector.load %arg2[%c2, %c0_2] : memref<9x128xf32, #tpu.memory_space<vmem>>, vector<1x128xf32>
    %5 = vector.shape_cast %4 : vector<1x128xf32> to vector<128xf32>
    %c3 = arith.constant 3 : index
    %c0_3 = arith.constant 0 : index
    %6 = vector.load %arg2[%c3, %c0_3] : memref<9x128xf32, #tpu.memory_space<vmem>>, vector<1x128xf32>
    %7 = vector.shape_cast %6 : vector<1x128xf32> to vector<128xf32>
    %c4 = arith.constant 4 : index
    %c0_4 = arith.constant 0 : index
    %8 = vector.load %arg2[%c4, %c0_4] : memref<9x128xf32, #tpu.memory_space<vmem>>, vector<1x128xf32>
    %9 = vector.shape_cast %8 : vector<1x128xf32> to vector<128xf32>
    %c5 = arith.constant 5 : index
    %c0_5 = arith.constant 0 : index
    %10 = vector.load %arg2[%c5, %c0_5] : memref<9x128xf32, #tpu.memory_space<vmem>>, vector<1x128xf32>
    %11 = vector.shape_cast %10 : vector<1x128xf32> to vector<128xf32>
    %c6 = arith.constant 6 : index
    %c0_6 = arith.constant 0 : index
    %12 = vector.load %arg2[%c6, %c0_6] : memref<9x128xf32, #tpu.memory_space<vmem>>, vector<1x128xf32>
    %13 = vector.shape_cast %12 : vector<1x128xf32> to vector<128xf32>
    %c7 = arith.constant 7 : index
    %c0_7 = arith.constant 0 : index
    %14 = vector.load %arg2[%c7, %c0_7] : memref<9x128xf32, #tpu.memory_space<vmem>>, vector<1x128xf32>
    %15 = vector.shape_cast %14 : vector<1x128xf32> to vector<128xf32>
    %c8 = arith.constant 8 : index
    %c0_8 = arith.constant 0 : index
    %16 = vector.load %arg2[%c8, %c0_8] : memref<9x128xf32, #tpu.memory_space<vmem>>, vector<1x128xf32>
    %17 = vector.shape_cast %16 : vector<1x128xf32> to vector<128xf32>
    %c0_9 = arith.constant 0 : index
    %c0_10 = arith.constant 0 : index
    %18 = vector.load %arg3[%c0_9, %c0_10] : memref<1x128xf32, #tpu.memory_space<vmem>>, vector<1x128xf32>
    %19 = tpu.iota {dimensions = array<i32: 0>} : vector<8x1xi32>
    %c-1_i32 = arith.constant -1 : i32
    %20 = vector.broadcast %c-1_i32 : i32 to vector<8x1xi32>
    %21 = arith.addi %19, %20 : vector<8x1xi32>
    %c0_i32 = arith.constant 0 : i32
    %22 = vector.broadcast %c0_i32 : i32 to vector<8x1xi32>
    %23 = arith.cmpi sge, %21, %22 : vector<8x1xi32>
    %c-1_i32_11 = arith.constant -1 : i32
    %24 = vector.broadcast %c-1_i32_11 : i32 to vector<8x1xi32>
    %25 = arith.addi %19, %24 : vector<8x1xi32>
    %c8_i32 = arith.constant 8 : i32
    %26 = vector.broadcast %c8_i32 : i32 to vector<8x1xi32>
    %27 = arith.cmpi slt, %25, %26 : vector<8x1xi32>
    %28 = arith.andi %23, %27 : vector<8x1xi1>
    %c1_i32 = arith.constant 1 : i32
    %29 = vector.broadcast %c1_i32 : i32 to vector<8x1xi32>
    %30 = arith.addi %19, %29 : vector<8x1xi32>
    %c0_i32_12 = arith.constant 0 : i32
    %31 = vector.broadcast %c0_i32_12 : i32 to vector<8x1xi32>
    %32 = arith.cmpi sge, %30, %31 : vector<8x1xi32>
    %c1_i32_13 = arith.constant 1 : i32
    %33 = vector.broadcast %c1_i32_13 : i32 to vector<8x1xi32>
    %34 = arith.addi %19, %33 : vector<8x1xi32>
    %c8_i32_14 = arith.constant 8 : i32
    %35 = vector.broadcast %c8_i32_14 : i32 to vector<8x1xi32>
    %36 = arith.cmpi slt, %34, %35 : vector<8x1xi32>
    %37 = arith.andi %32, %36 : vector<8x1xi1>
    %c0_i32_15 = arith.constant 0 : i32
    %38 = arith.index_cast %c0_i32_15 : i32 to index
    %c0_16 = arith.constant 0 : index
    %c0_17 = arith.constant 0 : index
    %c0_18 = arith.constant 0 : index
    %39 = vector.load %arg1[%38, %c0_16, %c0_17, %c0_18] : memref<1x8x8x128xf32, #tpu.memory_space<vmem>>, vector<1x8x8x128xf32>
    %40 = vector.shape_cast %39 : vector<1x8x8x128xf32> to vector<8x8x128xf32>
    %c1_i32_19 = arith.constant 1 : i32
    %41 = tpu.dynamic_rotate %40 by %c1_i32_19 dim 1 : vector<8x8x128xf32>, i32 -> vector<8x8x128xf32>
    %cst = arith.constant 0.000000e+00 : f32
    %42 = vector.shape_cast %28 : vector<8x1xi1> to vector<1x8x1xi1>
    %43 = vector.broadcast %42 : vector<1x8x1xi1> to vector<8x8x128xi1>
    %44 = vector.broadcast %cst : f32 to vector<8x8x128xf32>
    %45 = arith.select %43, %41, %44 : vector<8x8x128xi1>, vector<8x8x128xf32>
    %c7_i32 = arith.constant 7 : i32
    %46 = tpu.dynamic_rotate %40 by %c7_i32 dim 1 : vector<8x8x128xf32>, i32 -> vector<8x8x128xf32>
    %cst_20 = arith.constant 0.000000e+00 : f32
    %47 = vector.shape_cast %37 : vector<8x1xi1> to vector<1x8x1xi1>
    %48 = vector.broadcast %47 : vector<1x8x1xi1> to vector<8x8x128xi1>
    %49 = vector.broadcast %cst_20 : f32 to vector<8x8x128xf32>
    %50 = arith.select %48, %46, %49 : vector<8x8x128xi1>, vector<8x8x128xf32>
    %51 = vector.shape_cast %1 : vector<128xf32> to vector<1x1x128xf32>
    %52 = vector.broadcast %51 : vector<1x1x128xf32> to vector<8x8x128xf32>
    %53 = arith.mulf %45, %52 : vector<8x8x128xf32>
    %54 = vector.shape_cast %3 : vector<128xf32> to vector<1x1x128xf32>
    %55 = vector.broadcast %54 : vector<1x1x128xf32> to vector<8x8x128xf32>
    %56 = arith.mulf %40, %55 : vector<8x8x128xf32>
    %57 = arith.addf %53, %56 : vector<8x8x128xf32>
    %58 = vector.shape_cast %5 : vector<128xf32> to vector<1x1x128xf32>
    %59 = vector.broadcast %58 : vector<1x1x128xf32> to vector<8x8x128xf32>
    %60 = arith.mulf %50, %59 : vector<8x8x128xf32>
    %61 = arith.addf %57, %60 : vector<8x8x128xf32>
    %cst_21 = arith.constant 0.000000e+00 : f32
    %62 = vector.broadcast %cst_21 : f32 to vector<1x8x128xf32>
    %63 = vector.extract_strided_slice %61 {offsets = [0, 0, 0], sizes = [7, 8, 128], strides = [1, 1, 1]} : vector<8x8x128xf32> to vector<7x8x128xf32>
    %64 = tpu.concatenate %62, %63 in 0 : vector<1x8x128xf32>, vector<7x8x128xf32> -> vector<8x8x128xf32>
    %65 = vector.shape_cast %7 : vector<128xf32> to vector<1x1x128xf32>
    %66 = vector.broadcast %65 : vector<1x1x128xf32> to vector<8x8x128xf32>
    %67 = arith.mulf %45, %66 : vector<8x8x128xf32>
    %68 = vector.shape_cast %9 : vector<128xf32> to vector<1x1x128xf32>
    %69 = vector.broadcast %68 : vector<1x1x128xf32> to vector<8x8x128xf32>
    %70 = arith.mulf %40, %69 : vector<8x8x128xf32>
    %71 = arith.addf %67, %70 : vector<8x8x128xf32>
    %72 = vector.shape_cast %11 : vector<128xf32> to vector<1x1x128xf32>
    %73 = vector.broadcast %72 : vector<1x1x128xf32> to vector<8x8x128xf32>
    %74 = arith.mulf %50, %73 : vector<8x8x128xf32>
    %75 = arith.addf %71, %74 : vector<8x8x128xf32>
    %76 = arith.addf %64, %75 : vector<8x8x128xf32>
    %77 = vector.shape_cast %13 : vector<128xf32> to vector<1x1x128xf32>
    %78 = vector.broadcast %77 : vector<1x1x128xf32> to vector<8x8x128xf32>
    %79 = arith.mulf %45, %78 : vector<8x8x128xf32>
    %80 = vector.shape_cast %15 : vector<128xf32> to vector<1x1x128xf32>
    %81 = vector.broadcast %80 : vector<1x1x128xf32> to vector<8x8x128xf32>
    %82 = arith.mulf %40, %81 : vector<8x8x128xf32>
    %83 = arith.addf %79, %82 : vector<8x8x128xf32>
    %84 = vector.shape_cast %17 : vector<128xf32> to vector<1x1x128xf32>
    %85 = vector.broadcast %84 : vector<1x1x128xf32> to vector<8x8x128xf32>
    %86 = arith.mulf %50, %85 : vector<8x8x128xf32>
    %87 = arith.addf %83, %86 : vector<8x8x128xf32>
    %88 = vector.extract_strided_slice %87 {offsets = [1, 0, 0], sizes = [7, 8, 128], strides = [1, 1, 1]} : vector<8x8x128xf32> to vector<7x8x128xf32>
    %cst_22 = arith.constant 0.000000e+00 : f32
    %89 = vector.broadcast %cst_22 : f32 to vector<1x8x128xf32>
    %90 = tpu.concatenate %88, %89 in 0 : vector<7x8x128xf32>, vector<1x8x128xf32> -> vector<8x8x128xf32>
    %91 = arith.addf %76, %90 : vector<8x8x128xf32>
    %92 = vector.shape_cast %18 : vector<1x128xf32> to vector<1x1x128xf32>
    %93 = vector.broadcast %92 : vector<1x1x128xf32> to vector<8x8x128xf32>
    %94 = arith.addf %91, %93 : vector<8x8x128xf32>
    %cst_23 = arith.constant 5.000000e-01 : f32
    %95 = vector.broadcast %cst_23 : f32 to vector<8x8x128xf32>
    %96 = arith.mulf %95, %94 : vector<8x8x128xf32>
    %cst_24 = arith.constant 0.707106769 : f32
    %97 = vector.broadcast %cst_24 : f32 to vector<8x8x128xf32>
    %98 = arith.mulf %94, %97 : vector<8x8x128xf32>
    %99 = math.absf %98 : vector<8x8x128xf32>
    %cst_25 = arith.constant 0.327591091 : f32
    %100 = vector.broadcast %cst_25 : f32 to vector<8x8x128xf32>
    %101 = arith.mulf %100, %99 : vector<8x8x128xf32>
    %cst_26 = arith.constant 1.000000e+00 : f32
    %102 = vector.broadcast %cst_26 : f32 to vector<8x8x128xf32>
    %103 = arith.addf %102, %101 : vector<8x8x128xf32>
    %104 = tpu.reciprocal %103 {approx = true} : vector<8x8x128xf32> -> vector<8x8x128xf32>
    %105 = arith.mulf %103, %104 : vector<8x8x128xf32>
    %cst_27 = arith.constant 2.000000e+00 : f32
    %106 = vector.broadcast %cst_27 : f32 to vector<8x8x128xf32>
    %107 = arith.subf %106, %105 : vector<8x8x128xf32>
    %108 = arith.mulf %104, %107 : vector<8x8x128xf32>
    %cst_28 = arith.constant 1.06140542 : f32
    %109 = vector.broadcast %cst_28 : f32 to vector<8x8x128xf32>
    %110 = arith.mulf %109, %108 : vector<8x8x128xf32>
    %cst_29 = arith.constant -1.45315206 : f32
    %111 = vector.broadcast %cst_29 : f32 to vector<8x8x128xf32>
    %112 = arith.addf %110, %111 : vector<8x8x128xf32>
    %113 = arith.mulf %112, %108 : vector<8x8x128xf32>
    %cst_30 = arith.constant 1.42141378 : f32
    %114 = vector.broadcast %cst_30 : f32 to vector<8x8x128xf32>
    %115 = arith.addf %113, %114 : vector<8x8x128xf32>
    %116 = arith.mulf %115, %108 : vector<8x8x128xf32>
    %cst_31 = arith.constant -0.284496725 : f32
    %117 = vector.broadcast %cst_31 : f32 to vector<8x8x128xf32>
    %118 = arith.addf %116, %117 : vector<8x8x128xf32>
    %119 = arith.mulf %118, %108 : vector<8x8x128xf32>
    %cst_32 = arith.constant 0.254829586 : f32
    %120 = vector.broadcast %cst_32 : f32 to vector<8x8x128xf32>
    %121 = arith.addf %119, %120 : vector<8x8x128xf32>
    %122 = arith.mulf %121, %108 : vector<8x8x128xf32>
    %cst_33 = arith.constant 0.000000e+00 : f32
    %123 = vector.broadcast %cst_33 : f32 to vector<8x8x128xf32>
    %124 = arith.subf %123, %99 : vector<8x8x128xf32>
    %125 = arith.mulf %124, %99 : vector<8x8x128xf32>
    %126 = math.exp %125 : vector<8x8x128xf32>
    %127 = arith.mulf %122, %126 : vector<8x8x128xf32>
    %cst_34 = arith.constant 1.000000e+00 : f32
    %128 = vector.broadcast %cst_34 : f32 to vector<8x8x128xf32>
    %129 = arith.subf %128, %127 : vector<8x8x128xf32>
    %cst_35 = arith.constant 0.000000e+00 : f32
    %130 = vector.broadcast %cst_35 : f32 to vector<8x8x128xf32>
    %131 = arith.cmpf oge, %98, %130 : vector<8x8x128xf32>
    %cst_36 = arith.constant 0.000000e+00 : f32
    %132 = vector.broadcast %cst_36 : f32 to vector<8x8x128xf32>
    %133 = arith.subf %132, %129 : vector<8x8x128xf32>
    %134 = arith.select %131, %129, %133 : vector<8x8x128xi1>, vector<8x8x128xf32>
    %cst_37 = arith.constant 1.000000e+00 : f32
    %135 = vector.broadcast %cst_37 : f32 to vector<8x8x128xf32>
    %136 = arith.addf %135, %134 : vector<8x8x128xf32>
    %137 = arith.mulf %96, %136 : vector<8x8x128xf32>
    %138 = arith.addf %40, %137 : vector<8x8x128xf32>
    %139 = arith.index_cast %c0_i32_15 : i32 to index
    %c0_38 = arith.constant 0 : index
    %c0_39 = arith.constant 0 : index
    %c0_40 = arith.constant 0 : index
    %140 = vector.load %arg4[%139, %c0_38, %c0_39, %c0_40] : memref<1x8x8x128xf32, #tpu.memory_space<vmem>>, vector<1x8x8x128xf32>
    %141 = vector.shape_cast %140 : vector<1x8x8x128xf32> to vector<8x8x128xf32>
    %142 = vector.shape_cast %138 : vector<8x8x128xf32> to vector<1x8x8x128xf32>
    tpu.vector_store %arg4[%139, %c0_38, %c0_39, %c0_40], %142 {strides = array<i32>} : memref<1x8x8x128xf32, #tpu.memory_space<vmem>>, vector<1x8x8x128xf32>,
    %c1_i32_41 = arith.constant 1 : i32
    return
  }
  func.func @transform_0(%arg0: i32) -> (i32, i32, i32, i32) {
    %c0_i32 = arith.constant 0 : i32
    %c0_i32_0 = arith.constant 0 : i32
    %c0_i32_1 = arith.constant 0 : i32
    %c0_i32_2 = arith.constant 0 : i32
    return %arg0, %c0_i32, %c0_i32_0, %c0_i32_1 : i32, i32, i32, i32
  }
  func.func @transform_1(%arg0: i32) -> (i32, i32) {
    %c0_i32 = arith.constant 0 : i32
    %c0_i32_0 = arith.constant 0 : i32
    %c0_i32_1 = arith.constant 0 : i32
    return %c0_i32, %c0_i32_0 : i32, i32
  }
  func.func @transform_2(%arg0: i32) -> (i32, i32) {
    %c0_i32 = arith.constant 0 : i32
    %c0_i32_0 = arith.constant 0 : i32
    %c0_i32_1 = arith.constant 0 : i32
    return %c0_i32, %c0_i32_0 : i32, i32
  }
  func.func @transform_3(%arg0: i32) -> (i32, i32, i32, i32) {
    %c0_i32 = arith.constant 0 : i32
    %c0_i32_0 = arith.constant 0 : i32
    %c0_i32_1 = arith.constant 0 : i32
    %c0_i32_2 = arith.constant 0 : i32
    return %arg0, %c0_i32, %c0_i32_0, %c0_i32_1 : i32, i32, i32, i32
  }
}

</mosaic_0001>

<bundles_post_ra>
// kernel: tpu_custom_call.1
= control target key start
LH: loop header
LB: loop body
LE: loop exit
PB: predicated region body
PF: predicated region fallthrough
CT: control target
= control target key end

     0   :  { %8 = vsyncpa [#allocation3], 0  ;;  %s1644_s0 = inlined_call_operand.hbm [shape: f32[2,8,8,128], index: 0, kind: input, shape index: {}]   ;;  %s1645_s1 = inlined_call_operand.hbm [shape: f32[9,128], index: 1, kind: input, shape index: {}]   ;;  %s1646_s2 = inlined_call_operand.vmem [shape: f32[1,128], index: 2, kind: input, shape index: {}]   ;;  %s1647_s3 = inlined_call_operand.hbm [shape: f32[2,8,8,128], index: 3, kind: output, shape index: {}]  }
   0x1   :  { %10 = vsyncpa [#allocation3 + $0x1], 0 }
   0x2   :  { %11 = vsyncpa [#allocation6], 0 }
   0x3   :  { %12 = vsyncpa [#allocation4], 0 }
   0x4   :  { %14 = vsyncpa [#allocation4 + $0x1], 0  ;;  %s1067_s12 = smov 0   ;;  %s1069_s13 = smov 0  }
   0x5   :  { %s1071_s14 = smov 0   ;;  %s1073_s15 = smov 0  }
   0x6 LB: > { %s1088_s16 = sadd.s32 4294967295, %s1038_s15   ;;  %s789_s17 = sadd.s32 4294967294, %s1038_s15   ;;  %s1038_s15 = sphi %s1073_s15, %s1670_s15   ;;  %s1034_s14 = sphi %s1071_s14, %s1669_s14   ;;  %s1030_s13 = sphi %s1069_s13, %s1668_s13   ;;  %s1026_s12 = sphi %s1067_s12, %s1667_s12  }
   0x7   : > { %p40_p0 = scmp.ne.s32.totalorder %s1030_s13, %s1026_s12  ;;  %p1648_p1 = scmp.eq.s32.totalorder %s1088_s16, 0 }
   0x8   : > { %p112_p3 = scmp.eq.s32.totalorder %s789_s17, 1  ;;  %p790_p5 = scmp.ge.s32.totalorder %s1038_s15, 1 }
   0x9   : > { %p1097_p4 = por %p1648_p1, %p40_p0  ;;  %p119_p7 = scmp.lt.s32.totalorder %s1038_s15, 3 }
   0xa   : > { %p1102_p6 = por %p112_p3, %p40_p0  ;;  %s1040_s21 = smov [#allocation5]  }
   0xb   : > { %s1652_s18 = scalar_select %p1097_p4, 1, 0 }
   0xc   : > { %s1653_s19 = scalar_select %p1102_p6, 1, 0 }
   0xd   : > { %p1107_p8 = pnand %p790_p5, %p119_p7  ;;  %s131_s22 = sshll.u32 %s1040_s21, 4  ;;  %s1111_s22 = int_to_ptr.vmem [resolvable:$true] %s131_s22 }
   0xe   : > { %s1123_s24 = sadd.s32 1, %s1038_s15   ;;  %s27_s25 = sadd.s32 1, %s1034_s14 }
   0xf   : > { %s1654_s20 = scalar_select %p1107_p8, 1, 0 }
  0x10   : > { %p825_p9 = pneg %p1107_p8  ;;  %s24_s26 = ssub.s32 %s1038_s15, %s1123_s24 }
  0x11   : > { %s910_s29 = scalar_lea.hbm %s1645_s1, 256 }
  0x12   : > { %p1118_p11 = pnand %p825_p9, %p1648_p1  ;;  %p911_p12 = scmp.ne.s32.totalorder %s1645_s1, %s910_s29 }
  0x13   : > { %p917_p5 = scmp.lt.u32.totalorder %s910_s29, %s1645_s1 }
  0x14   : > { %p912_p13 = pneg %p1118_p11 }
  0x16   : > { %p913_p0 = pnand %p912_p13, %p911_p12 }
  0x18   : > { %p914_p3 = pneg %p913_p0 }
  0x1a   : > { %p919_p7 = pnand %p917_p5, %p914_p3 }
  0x1c   : > { %922 = shalt.err (!%p919_p7)
}
  0x1d   : > { %s923_s7 = scalar_lea.vmem %s1111_s22, 256  ;;  %p931_p2 = scmp.lt.s32.totalorder %s1111_s22, %s1111_s22 }
  0x1e   : > { %p924_p9 = scmp.ne.s32.totalorder %s1111_s22, %s923_s7  ;;  %p932_p6 = scmp.lt.s32.totalorder %s923_s7, %s923_s7 }
  0x20   : > { %p926_p10 = pnand %p924_p9, %p912_p13  ;;  %p933_p4 = por %p932_p6, %p931_p2 }
  0x22   : > { %p927_p1 = pneg %p926_p10 }
  0x24   : > { %p934_p8 = pnand %p933_p4, %p927_p1 }
  0x26   : > { %937 = shalt.err (!%p934_p8)
}
  0x27   : > { %s1041_s8 = smov 128   ;;  %s1042_s9 = smov 8  }
  0x28   : > { %828 = dma.hbm_to_vmem [thread:$0]  (!%p1118_p11), %s1645_s1, 256, %s1111_s22, [#allocation6], %s1041_s8, %s1041_s8, %s1042_s9  }
  0x29   : > { %p25_p1 = scmp.eq.s32.totalorder %s24_s26, 0  ;;  %p34_p2 = scmp.ne.s32.totalorder %s1034_s14, %s1030_s13 }
  0x2a   : > { %p35_p4 = scmp.eq.s32.totalorder %s1038_s15, 0  ;;  %p838_p6 = scmp.lt.s32.totalorder %s1038_s15, 2 }
  0x2b   : > { %s1157_s17 = scalar_select %p25_p1, %s1034_s14, %s27_s25  }
  0x2c   : > { %p36_p8 = por %p35_p4, %p34_p2  ;;  %p1656_p10 = scmp.eq.s32.totalorder %s1088_s16, 1 }
  0x2d   : > { %s148_s23 = sand.u32 1, %s1034_s14   ;;  %s815_s27 = sshll.u32 %s1038_s15, 10 }
  0x2e   : > { %p1161_p12 = por %p1656_p10, %p34_p2  ;;  %s793_s28 = sshll.u32 %s148_s23, 6 }
  0x2f   : > { %s1170_s4 = scalar_lea.hbm %s1644_s0, %s815_s27  ;;  %s152_s22 = scalar_lea.vmem [#allocation2], %s793_s28 }
  0x30   : > { %s159_s25 = sshll.u32 %s152_s22, 4  ;;  %p1172_p11 = pnand %p838_p6, %p36_p8  ;;  %s1176_s25 = int_to_ptr.vmem [resolvable:$true] %s159_s25 }
  0x31   : > { %s1178_s5 = scalar_lea.sflag [#allocation3], %s148_s23  ;;  %s938_s6 = scalar_lea.hbm %s1170_s4, 1024 }
  0x32   : > { %p939_p13 = scmp.ne.s32.totalorder %s1170_s4, %s938_s6  ;;  %p940_p0 = pneg %p1172_p11 }
  0x33   : > { %s943_s11 = scalar_lea.hbm %s1644_s0, 2048  ;;  %p944_p7 = scmp.lt.u32.totalorder %s1170_s4, %s1644_s0 }
  0x34   : > { %p941_p3 = pnand %p940_p0, %p939_p13  ;;  %p945_p9 = scmp.lt.u32.totalorder %s943_s11, %s938_s6 }
  0x35   : > { %p947_p2 = scmp.lt.u32.totalorder %s938_s6, %s1170_s4 }
  0x36   : > { %p942_p5 = pneg %p941_p3  ;;  %p946_p1 = por %p945_p9, %p944_p7 }
  0x38   : > { %p948_p4 = por %p947_p2, %p946_p1 }
  0x3a   : > { %p949_p6 = pnand %p948_p4, %p942_p5 }
  0x3c   : > { %952 = shalt.err (!%p949_p6)
}
  0x3d   : > { %s953_s23 = scalar_lea.vmem %s1176_s25, 1024  ;;  %s1043_s29 = smov [#allocation2]  }
  0x3e   : > { %p954_p8 = scmp.ne.s32.totalorder %s1176_s25, %s953_s23  ;;  %s958_s30 = sshll.u32 %s1043_s29, 4  ;;  %s959_s30 = int_to_ptr.vmem [resolvable:$false] %s958_s30 }
  0x3f   : > { %s960_s22 = scalar_lea.vmem %s959_s30, 2048  ;;  %p961_p3 = scmp.lt.s32.totalorder %s1176_s25, %s959_s30 }
  0x40   : > { %p956_p10 = pnand %p954_p8, %p940_p0  ;;  %p962_p7 = scmp.lt.s32.totalorder %s960_s22, %s953_s23 }
  0x42   : > { %p957_p13 = pneg %p956_p10  ;;  %p963_p9 = por %p962_p7, %p961_p3 }
  0x44   : > { %p964_p1 = pnand %p963_p9, %p957_p13 }
  0x46   : > { %967 = shalt.err (!%p964_p1)
}
  0x47   : > { %832 = dma.hbm_to_vmem [thread:$0]  (!%p1172_p11), %s1170_s4, 1024, %s1176_s25, %s1178_s5, %s1041_s8, %s1041_s8, %s1042_s9  }
  0x48   : > { %p1659_p0 = scmp.ne.s32.totalorder %s1654_s20, 0 }
  0x4a   : > { %171 = sbr.rel (%p1659_p0) target bundleno = 243 (0xf3), region = 32 }
  0x51   : > { %s1212_s6 = sand.u32 1, %s1030_s13   ;;  %p1660_p5 = scmp.ne.s32.totalorder %s1652_s18, 0 }
  0x52   : > { %s797_s7 = sshll.u32 %s1212_s6, 6  ;;  %s174_s10 = scalar_lea.sflag [#allocation3], %s1212_s6 }
  0x53   : > { %s1218_s26 = scalar_lea.vmem [#allocation2], %s797_s7 }
  0x54   : > { %1013 = dma.done.wait (%p1660_p5), %s174_s10, 1024  }
  0x55   : > { %1015 = vsyncadd (%p1660_p5), %s174_s10, 4294966272  ;;  %p1661_p11 = scmp.eq.s32.totalorder %s1088_s16, 0 }
  0x57   : > { %1017 = dma.done.wait (%p1661_p11), [#allocation6], 256   ;;  %p1662_p2 = pmov %p1661_p11 }
  0x58   : > { %v214_v0 = vlaneseq  ;;  %v1232_v4 = vld [vmem:[#allocation5] ss:$0 sm:$0xff]  ;;  %v1234_v5 = vld [vmem:[#allocation5 + $0x1] ss:$0 sm:$0xff]  ;;  %v1236_v6 = vld [vmem:[#allocation5 + $0x4] ss:$0 sm:$0xff] }
  0x59   : > { %1019 = vsyncadd (%p1662_p2), [#allocation6], 4294967040  ;;  %v1238_v7 = vld [vmem:[#allocation5 + $0x7] ss:$0 sm:$0xff]  ;;  %v1240_v8 = vld [vmem:[#allocation5 + $0x6] ss:$0 sm:$0xff] }
  0x5a   : > { %v215_v1 = vshrl.u32 %v214_v0, 7  ;;  %v1245_v9 = vld [vmem:[%s1218_s26] sm:$0xff]  ;;  %v1248_v10 = vld [vmem:[%s1218_s26 + $0x8] sm:$0xff]  ;;  %v1257_v16 = vld [vmem:[%s1218_s26 + $0x10] sm:$0xff]  ;;  %s1528_s8 = scalar_lea.vmem [#allocation7], %s797_s7  ;;  %s816_s4 = sshll.u32 %s1088_s16, 10 }
  0x5b   : > { %v1250_v11 = vld [vmem:[#allocation5 + $0x3] ss:$0 sm:$0xff]  ;;  %v232_v12 = vrot.slane %v1245_v9, 7  ;;  %v233_v13 = vrot.slane %v1248_v10, 7  ;;  %v250_v14 = vrot.slane %v1245_v9, 1  ;;  %v251_v15 = vrot.slane %v1248_v10, 1  ;;  %s1598_s11 = scalar_lea.hbm %s1647_s3, %s816_s4 }
  0x5c   : > { %v1228_v2 = vadd.s32 4294967295, %v215_v1  ;;  %v1230_v3 = vadd.s32 1, %v215_v1  ;;  %v1259_v17 = vld [vmem:[#allocation5 + $0x8] ss:$0 sm:$0xff]  ;;  %v283_v18 = vmul.f32 %v1234_v5, %v1245_v9  ;;  %v331_v19 = vmul.f32 %v1236_v6, %v1245_v9  ;;  %v1267_v21 = vld [vmem:[#allocation5 + $0x2] ss:$0 sm:$0xff] }
  0x5d   : > { %v390_v20 = vmul.f32 %v1238_v7, %v1248_v10  ;;  %v234_v22 = vrot.slane %v1257_v16, 7  ;;  %v1270_v23 = vld [vmem:[#allocation5 + $0x5] ss:$0 sm:$0xff]  ;;  %v252_v34 = vrot.slane %v1257_v16, 1  ;;  %v1291_v40 = vld [vmem:[%s1218_s26 + $0x18] sm:$0xff]  ;;  %v332_v42 = vmul.f32 %v1236_v6, %v1248_v10  ;;  %s706_s9 = sshll.u32 %s1528_s8, 4  ;;  %s1593_s9 = int_to_ptr.vmem [resolvable:$true] %s706_s9 }
  0x5e   : > { %vm217_vm0 = vcmp.ge.s32.totalorder %v1228_v2, 0  ;;  %vm222_vm1 = vcmp.lt.s32.totalorder %v1230_v3, 8  ;;  %v391_v48 = vmul.f32 %v1238_v7, %v1257_v16  ;;  %v1304_v49 = vld [vmem:[%s1646_s2] ss:$0 sm:$0xff]  ;;  %v235_v52 = vrot.slane %v1291_v40, 7  ;;  %s693_s27 = scalar_lea.sflag [#allocation4], %s1212_s6 }
  0x5f   : > { %v242_v24 = vsel %vm217_vm0, %v232_v12, 0.0  ;;  %v243_v25 = vsel %vm217_vm0, %v233_v13, 0.0  ;;  %v260_v26 = vsel %vm222_vm1, %v250_v14, 0.0  ;;  %v261_v27 = vsel %vm222_vm1, %v251_v15, 0.0  ;;  %s968_s28 = scalar_lea.vmem %s1593_s9, 1024  ;;  %s1044_s16 = smov [#allocation7]  }
  0x60   : > { %v272_v28 = vmul.f32 %v1232_v4, %v242_v24  ;;  %v319_v29 = vmul.f32 %v1250_v11, %v242_v24  ;;  %v351_v30 = vmul.f32 %v1270_v23, %v260_v26  ;;  %v379_v31 = vmul.f32 %v1240_v8, %v243_v25  ;;  %p969_p4 = scmp.ne.s32.totalorder %s1593_s9, %s968_s28  ;;  %s972_s23 = sshll.u32 %s1044_s16, 4  ;;  %s973_s23 = int_to_ptr.vmem [resolvable:$false] %s972_s23 }
  0x61   : > { %v408_v32 = vmul.f32 %v1259_v17, %v261_v27  ;;  %v244_v33 = vsel %vm217_vm0, %v234_v22, 0.0  ;;  %v301_v35 = vmul.f32 %v1267_v21, %v260_v26  ;;  %v320_v39 = vmul.f32 %v1250_v11, %v243_v25  ;;  %v1335_v26 = vld [vmem:[%s1218_s26 + $0x20] sm:$0xff]  ;;  %s974_s29 = scalar_lea.vmem %s973_s23, 2048  ;;  %p975_p10 = scmp.lt.s32.totalorder %s1593_s9, %s973_s23 }
  0x62   : > { %v339_v36 = vadd.f32 %v331_v19, %v319_v29  ;;  %v397_v37 = vadd.f32 %v390_v20, %v379_v31  ;;  %v290_v38 = vadd.f32 %v283_v18, %v272_v28  ;;  %v262_v41 = vsel %vm222_vm1, %v252_v34, 0.0  ;;  %p970_p6 = pnand %p969_p4, %p1161_p12  ;;  %p976_p13 = scmp.lt.s32.totalorder %s974_s29, %s968_s28 }
  0x63   : > { %v352_v43 = vmul.f32 %v1270_v23, %v261_v27  ;;  %v380_v44 = vmul.f32 %v1240_v8, %v244_v33  ;;  %v340_v50 = vadd.f32 %v332_v42, %v320_v39  ;;  %v409_v51 = vmul.f32 %v1259_v17, %v262_v41 }
  0x64   : > { %v359_v45 = vadd.f32 %v351_v30, %v339_v36  ;;  %v415_v46 = vadd.f32 %v408_v32, %v397_v37  ;;  %v308_v47 = vadd.f32 %v301_v35, %v290_v38  ;;  %v253_v53 = vrot.slane %v1291_v40, 1  ;;  %p971_p8 = pneg %p970_p6  ;;  %p977_p3 = por %p976_p13, %p975_p10 }
  0x65   : > { %v398_v55 = vadd.f32 %v391_v48, %v380_v44  ;;  %v273_v56 = vmul.f32 %v1232_v4, %v243_v25  ;;  %v284_v57 = vmul.f32 %v1234_v5, %v1248_v10  ;;  %v360_v58 = vadd.f32 %v352_v43, %v340_v50 }
  0x66   : > { %v422_v54 = vadd.f32 %v415_v46, %v359_v45  ;;  %v1314_v59 = vsel %vm217_vm0, %v235_v52, 0.0  ;;  %v302_v60 = vmul.f32 %v1267_v21, %v261_v27  ;;  %v321_v0 = vmul.f32 %v1250_v11, %v244_v33  ;;  %p978_p7 = pnand %p977_p3, %p971_p8 }
  0x67   : > { %v416_v62 = vadd.f32 %v409_v51, %v398_v55  ;;  %v291_v63 = vadd.f32 %v284_v57, %v273_v56  ;;  %v368_v1 = vadd.f32 %v360_v58, %v308_v47  ;;  %v333_v12 = vmul.f32 %v1236_v6, %v1257_v16 }
  0x68   : > { %v1318_v61 = vadd.f32 %v1304_v49, %v422_v54  ;;  %v353_v13 = vmul.f32 %v1270_v23, %v262_v41  ;;  %v381_v14 = vmul.f32 %v1240_v8, %v1314_v59  ;;  %v263_v18 = vsel %vm222_vm1, %v253_v53, 0.0  ;;  %v1362_v54 = vld [vmem:[%s1218_s26 + $0x28] sm:$0xff] }
  0x69   : > { %v392_v19 = vmul.f32 %v1238_v7, %v1291_v40  ;;  %v423_v20 = vadd.f32 %v416_v62, %v368_v1  ;;  %v309_v22 = vadd.f32 %v302_v60, %v291_v63  ;;  %v341_v24 = vadd.f32 %v333_v12, %v321_v0  ;;  %1663 = vst [vmem:[#allocation11_spill] sm:$0xff] %v1362_v54 }
  0x6a   : > { %v1327_v15 = vmul.f32 0.70710677, %v1318_v61  ;;  %v410_v25 = vmul.f32 %v1259_v17, %v263_v18  ;;  %v274_v31 = vmul.f32 %v1232_v4, %v244_v33  ;;  %v236_v35 = vrot.slane %v1335_v26, 7 }
  0x6b   : > { %v399_v28 = vadd.f32 %v392_v19, %v381_v14  ;;  %v1339_v29 = vadd.f32 %v1304_v49, %v423_v20  ;;  %v361_v30 = vadd.f32 %v353_v13, %v341_v24  ;;  %v285_v39 = vmul.f32 %v1234_v5, %v1257_v16 }
  0x6c   : > { %v460_v27 = vand.u32 2147483647, %v1327_v15  ;;  %v303_v43 = vmul.f32 %v1267_v21, %v262_v41  ;;  %v322_v44 = vmul.f32 %v1250_v11, %v1314_v59  ;;  %v254_v46 = vrot.slane %v1335_v26, 1 }
  0x6d   : > { %v417_v34 = vadd.f32 %v410_v25, %v399_v28  ;;  %v1344_v37 = vmul.f32 0.70710677, %v1339_v29  ;;  %v369_v38 = vadd.f32 %v361_v30, %v309_v22  ;;  %v292_v47 = vadd.f32 %v285_v39, %v274_v31 }
  0x6e   : > { %v468_v32 = vmul.f32 0.3275911, %v460_v27  ;;  %v588_v36 = vsub.f32 0.0, %v460_v27  ;;  %v334_v48 = vmul.f32 %v1236_v6, %v1291_v40  ;;  %v354_v50 = vmul.f32 %v1270_v23, %v263_v18 }
  0x6f   : > { %v461_v33 = vand.u32 2147483647, %v1344_v37  ;;  %v424_v45 = vadd.f32 %v417_v34, %v369_v38  ;;  %v246_v41 = vsel %vm217_vm0, %v236_v35, 0.0  ;;  %v310_v55 = vadd.f32 %v303_v43, %v292_v47 }
  0x70   : > { %v476_v42 = vadd.f32 1.0, %v468_v32  ;;  %v596_v51 = vmul.f32 %v588_v36, %v460_v27  ;;  %v342_v56 = vadd.f32 %v334_v48, %v322_v44  ;;  %v382_v57 = vmul.f32 %v1240_v8, %v246_v41 }
  0x71   : > { %v469_v52 = vmul.f32 0.3275911, %v461_v33  ;;  %v1357_v53 = vadd.f32 %v1304_v49, %v424_v45  ;;  %v393_v58 = vmul.f32 %v1238_v7, %v1335_v26  ;;  %v264_v63 = vsel %vm222_vm1, %v254_v46, 0.0 }
  0x72   : > { %878 = vrcp.f32 %v476_v42  ;;  %v362_v0 = vadd.f32 %v354_v50, %v342_v56  ;;  %v411_v12 = vmul.f32 %v1259_v17, %v264_v63  ;;  %v237_v13 = vrot.slane %v1362_v54, 7 }
  0x73   : > { %v477_v60 = vadd.f32 1.0, %v469_v52  ;;  %v1368_v62 = vmul.f32 0.70710677, %v1357_v53  ;;  %v400_v1 = vadd.f32 %v393_v58, %v382_v57  ;;  %v604_v19 = vmul.f32 1.442695, %v596_v51 }
  0x74   : > { %v370_v20 = vadd.f32 %v362_v0, %v310_v55  ;;  %v589_v24 = vsub.f32 0.0, %v461_v33  ;;  %v1377_v27 = vsel %vm217_vm0, %v237_v13, 0.0  ;;  %v275_v28 = vmul.f32 %v1232_v4, %v1314_v59 }
  0x75   : > { %880 = vrcp.f32 %v477_v60  ;;  %v462_v14 = vand.u32 2147483647, %v1368_v62  ;;  %v418_v22 = vadd.f32 %v411_v12, %v400_v1  ;;  %v255_v31 = vrot.slane %v1362_v54, 1  ;;  %v1410_v12 = vld [vmem:[%s1218_s26 + $0x30] sm:$0xff] }
  0x76   : > { %v286_v32 = vmul.f32 %v1234_v5, %v1291_v40  ;;  %v304_v34 = vmul.f32 %v1267_v21, %v263_v18  ;;  %v323_v38 = vmul.f32 %v1250_v11, %v246_v41  ;;  %v335_v39 = vmul.f32 %v1236_v6, %v1335_v26 }
  0x77   : > { %v470_v25 = vmul.f32 0.3275911, %v462_v14  ;;  %v425_v30 = vadd.f32 %v418_v22, %v370_v20  ;;  %v590_v36 = vsub.f32 0.0, %v462_v14  ;;  %v355_v45 = vmul.f32 %v1270_v23, %v264_v63 }
  0x78   : > { %v293_v59 = vadd.f32 %v286_v32, %v275_v28  ;;  %v383_v46 = vmul.f32 %v1240_v8, %v1377_v27  ;;  %v597_v18 = vmul.f32 %v589_v24, %v461_v33  ;;  %v343_v48 = vadd.f32 %v335_v39, %v323_v38 }
  0x79   : > { %v478_v35 = vadd.f32 1.0, %v470_v25  ;;  %v1389_v44 = vadd.f32 %v1304_v49, %v425_v30  ;;  %v1399_v51 = vsel %vm222_vm1, %v255_v31, 0.0  ;;  %v394_v55 = vmul.f32 %v1238_v7, %v1362_v54 }
  0x7a   : > { %v311_v52 = vadd.f32 %v304_v34, %v293_v59  ;;  %v598_v57 = vmul.f32 %v590_v36, %v462_v14  ;;  %v363_v58 = vadd.f32 %v355_v45, %v343_v48  ;;  %v1406_v33 = vmul.f32 0.5, %v1318_v61 }
  0x7b   : > { %882 = vrcp.f32 %v478_v35  ;;  %v1395_v50 = vmul.f32 0.70710677, %v1389_v44  ;;  %v401_v1 = vadd.f32 %v394_v55, %v383_v46  ;;  %v276_v24 = vmul.f32 %v1232_v4, %v246_v41 }
  0x7c   : > { %v879_v43 = vpop.eup %878  ;;  %884 = vpow2.f32 %v604_v19  ;;  %v371_v22 = vadd.f32 %v363_v58, %v311_v52  ;;  %v606_v25 = vmul.f32 1.442695, %v597_v18  ;;  %v608_v61 = vmul.f32 1.442695, %v598_v57 }
  0x7d   : > { %v492_v47 = vmul.f32 %v879_v43, %v476_v42  ;;  %v412_v42 = vmul.f32 %v1259_v17, %v1399_v51  ;;  %v463_v0 = vand.u32 2147483647, %v1395_v50  ;;  %v238_v32 = vrot.slane %v1410_v12, 7 }
  0x7e   : > { %v287_v34 = vmul.f32 %v1234_v5, %v1335_v26  ;;  %v256_v19 = vrot.slane %v1410_v12, 1  ;;  %v305_v41 = vmul.f32 %v1267_v21, %v264_v63  ;;  %v336_v63 = vmul.f32 %v1236_v6, %v1362_v54 }
  0x7f   : > { %v500_v56 = vsub.f32 2.0, %v492_v47  ;;  %v881_v13 = vpop.eup %880  ;;  %v471_v28 = vmul.f32 0.3275911, %v463_v0  ;;  %v419_v30 = vadd.f32 %v412_v42, %v401_v1  ;;  %v591_v46 = vsub.f32 0.0, %v463_v0 }
  0x80   : > { %v493_v14 = vmul.f32 %v881_v13, %v477_v60  ;;  %v294_v59 = vadd.f32 %v287_v34, %v276_v24  ;;  %v324_v60 = vmul.f32 %v1250_v11, %v1377_v27  ;;  %v1431_v52 = vsel %vm217_vm0, %v238_v32, 0.0 }
  0x81   : > { %v1412_v20 = vmul.f32 %v879_v43, %v500_v56  ;;  %v479_v38 = vadd.f32 1.0, %v471_v28  ;;  %v426_v39 = vadd.f32 %v419_v30, %v371_v22  ;;  %v356_v55 = vmul.f32 %v1270_v23, %v1399_v51 }
  0x82   : > { %v501_v36 = vsub.f32 2.0, %v493_v14  ;;  %v1440_v58 = vsel %vm222_vm1, %v256_v19, 0.0  ;;  %v312_v42 = vadd.f32 %v305_v41, %v294_v59  ;;  %v344_v22 = vadd.f32 %v336_v63, %v324_v60 }
  0x83   : > { %v516_v31 = vmul.f32 1.0614054, %v1412_v20  ;;  %886 = vrcp.f32 %v479_v38  ;;  %v1426_v47 = vadd.f32 %v1304_v49, %v426_v39  ;;  %v384_v24 = vmul.f32 %v1240_v8, %v1431_v52 }
  0x84   : > { %v1423_v45 = vmul.f32 %v881_v13, %v501_v36  ;;  %v395_v30 = vmul.f32 %v1238_v7, %v1410_v12  ;;  %v599_v34 = vmul.f32 %v591_v46, %v463_v0  ;;  %v364_v39 = vadd.f32 %v356_v55, %v344_v22  ;;  %v1464_v55 = vld [vmem:[%s1218_s26 + $0x38] sm:$0xff] }
  0x85   : > { %v524_v43 = vadd.f32 -1.4531521, %v516_v31  ;;  %v883_v18 = vpop.eup %882  ;;  %v1443_v13 = vmul.f32 0.70710677, %v1426_v47  ;;  %v1454_v19 = vmul.f32 0.5, %v1339_v29  ;;  %888 = vpow2.f32 %v606_v25 }
  0x86   : > { %v517_v56 = vmul.f32 1.0614054, %v1423_v45  ;;  %v494_v57 = vmul.f32 %v883_v18, %v478_v35  ;;  %v413_v35 = vmul.f32 %v1259_v17, %v1440_v58  ;;  %v885_v31 = vpop.eup %884  ;;  %v402_v41 = vadd.f32 %v395_v30, %v384_v24 }
  0x87   : > { %v532_v48 = vmul.f32 %v524_v43, %v1412_v20  ;;  %v464_v36 = vand.u32 2147483647, %v1443_v13  ;;  %v372_v63 = vadd.f32 %v364_v39, %v312_v42  ;;  %890 = vpow2.f32 %v608_v61 }
  0x88   : > { %v525_v14 = vadd.f32 -1.4531521, %v517_v56  ;;  %v502_v28 = vsub.f32 2.0, %v494_v57  ;;  %v1460_v57 = vmul.f32 0.5, %v1357_v53  ;;  %v420_v46 = vadd.f32 %v413_v35, %v402_v41 }
  0x89   : > { %v540_v1 = vadd.f32 1.4214138, %v532_v48  ;;  %v472_v48 = vmul.f32 0.3275911, %v464_v36  ;;  %vm636_vm2 = vcmp.ge.f32.partialorder %v1327_v15, 0.0  ;;  %v592_v24 = vsub.f32 0.0, %v464_v36 }
  0x8a   : > { %v533_v43 = vmul.f32 %v525_v14, %v1423_v45  ;;  %v1457_v59 = vmul.f32 %v883_v18, %v502_v28  ;;  %v427_v14 = vadd.f32 %v420_v46, %v372_v63  ;;  %v239_v30 = vrot.slane %v1464_v55, 7 }
  0x8b   : > { %v548_v32 = vmul.f32 %v540_v1, %v1412_v20  ;;  %v610_v1 = vmul.f32 1.442695, %v599_v34  ;;  %v480_v18 = vadd.f32 1.0, %v472_v48  ;;  %v277_v34 = vmul.f32 %v1232_v4, %v1377_v27 }
  0x8c   : > { %v541_v56 = vadd.f32 1.4214138, %v533_v43  ;;  %v518_v0 = vmul.f32 1.0614054, %v1457_v59  ;;  %v1472_v61 = vadd.f32 %v1304_v49, %v427_v14  ;;  %v288_v41 = vmul.f32 %v1234_v5, %v1362_v54 }
  0x8d   : > { %v556_v60 = vadd.f32 -0.28449672, %v548_v32  ;;  %v887_v22 = vpop.eup %886  ;;  %892 = vrcp.f32 %v480_v18  ;;  %v600_v48 = vmul.f32 %v592_v24, %v464_v36  ;;  %vm637_vm3 = vcmp.ge.f32.partialorder %v1344_v37, 0.0 }
  0x8e   : > { %v549_v25 = vmul.f32 %v541_v56, %v1423_v45  ;;  %v526_v42 = vadd.f32 -1.4531521, %v518_v0  ;;  %v495_v28 = vmul.f32 %v887_v22, %v479_v38  ;;  %894 = vpow2.f32 %v610_v1 }
  0x8f   : > { %v564_v29 = vmul.f32 %v556_v60, %v1412_v20  ;;  %v1481_v63 = vmul.f32 0.70710677, %v1472_v61  ;;  %v1488_v27 = vsel %vm217_vm0, %v239_v30, 0.0  ;;  %v295_v36 = vadd.f32 %v288_v41, %v277_v34 }
  0x90   : > { %v557_v35 = vadd.f32 -0.28449672, %v549_v25  ;;  %v534_v32 = vmul.f32 %v526_v42, %v1457_v59  ;;  %v503_v43 = vsub.f32 2.0, %v495_v28  ;;  %v889_v25 = vpop.eup %888  ;;  %v325_v2 = vmul.f32 %v1250_v11, %v1431_v52 }
  0x91   : > { %v572_v53 = vadd.f32 0.2548296, %v564_v29  ;;  %v1493_v1 = vand.u32 2147483647, %v1481_v63  ;;  %v891_v30 = vpop.eup %890  ;;  %v337_v34 = vmul.f32 %v1236_v6, %v1410_v12  ;;  %vm638_vm4 = vcmp.ge.f32.partialorder %v1368_v62, 0.0 }
  0x92   : > { %v565_v38 = vmul.f32 %v557_v35, %v1423_v45  ;;  %v542_v60 = vadd.f32 1.4214138, %v534_v32  ;;  %v1484_v0 = vmul.f32 %v887_v22, %v503_v43  ;;  %v306_v22 = vmul.f32 %v1267_v21, %v1399_v51 }
  0x93   : > { %v580_v39 = vmul.f32 %v572_v53, %v1412_v20  ;;  %v257_v20 = vrot.slane %v1464_v55, 1  ;;  %v612_v53 = vmul.f32 1.442695, %v600_v48  ;;  %v473_v28 = vmul.f32 0.3275911, %v1493_v1 }
  0x94   : > { %v573_v46 = vadd.f32 0.2548296, %v565_v38  ;;  %v550_v29 = vmul.f32 %v542_v60, %v1457_v59  ;;  %v385_v3 = vmul.f32 %v1240_v8, %v1488_v27  ;;  %v289_v37 = vmul.f32 %v1234_v5, %v1410_v12 }
  0x95   : > { %v620_v56 = vmul.f32 %v885_v31, %v580_v39  ;;  %v519_v31 = vmul.f32 1.0614054, %v1484_v0  ;;  %v357_v39 = vmul.f32 %v1270_v23, %v1440_v58  ;;  %v481_v41 = vadd.f32 1.0, %v473_v28 }
  0x96   : > { %v581_v24 = vmul.f32 %v573_v46, %v1423_v45  ;;  %v558_v14 = vadd.f32 -0.28449672, %v550_v29  ;;  %v267_v45 = vsel %vm222_vm1, %v257_v20, 0.0  ;;  %v345_v46 = vadd.f32 %v337_v34, %v325_v2 }
  0x97   : > { %v628_v42 = vsub.f32 1.0, %v620_v56  ;;  %v527_v32 = vadd.f32 -1.4531521, %v519_v31  ;;  %v893_v38 = vpop.eup %892  ;;  %v313_v56 = vadd.f32 %v306_v22, %v295_v36  ;;  %896 = vrcp.f32 %v481_v41 }
  0x98   : > { %v621_v43 = vmul.f32 %v889_v25, %v581_v24  ;;  %v566_v51 = vmul.f32 %v558_v14, %v1457_v59  ;;  %v496_v25 = vmul.f32 %v893_v38, %v480_v18  ;;  %v895_v24 = vpop.eup %894  ;;  %v365_v28 = vadd.f32 %v357_v39, %v345_v46 }
  0x99   : > { %v644_v35 = vsub.f32 0.0, %v628_v42  ;;  %v535_v48 = vmul.f32 %v527_v32, %v1484_v0  ;;  %898 = vpow2.f32 %v612_v53  ;;  %v396_v18 = vmul.f32 %v1238_v7, %v1464_v55 }
  0x9a   : > { %v629_v31 = vsub.f32 1.0, %v621_v43  ;;  %v574_v54 = vadd.f32 0.2548296, %v566_v51  ;;  %v373_v22 = vadd.f32 %v365_v28, %v313_v56  ;;  %v307_v51 = vmul.f32 %v1267_v21, %v1440_v58 }
  0x9b   : > { %v652_v60 = vsel %vm636_vm2, %v628_v42, %v644_v35  ;;  %v543_v14 = vadd.f32 1.4214138, %v535_v48  ;;  %v504_v35 = vsub.f32 2.0, %v496_v25  ;;  %v403_v43 = vadd.f32 %v396_v18, %v385_v3 }
  0x9c   : > { %v660_v29 = vadd.f32 1.0, %v652_v60  ;;  %v645_v20 = vsub.f32 0.0, %v629_v31  ;;  %v582_v42 = vmul.f32 %v574_v54, %v1457_v59  ;;  %v414_v54 = vmul.f32 %v1259_v17, %v267_v45 }
  0x9d   : > { %v551_v36 = vmul.f32 %v543_v14, %v1484_v0  ;;  %v1523_v34 = vmul.f32 %v893_v38, %v504_v35  ;;  %v326_v56 = vmul.f32 %v1250_v11, %v1488_v27  ;;  %v338_v5 = vmul.f32 %v1236_v6, %v1464_v55 }
  0x9e   : > { %v668_v15 = vmul.f32 %v660_v29, %v1406_v33  ;;  %v653_v32 = vsel %vm637_vm3, %v629_v31, %v645_v20  ;;  %v622_v8 = vmul.f32 %v891_v30, %v582_v42  ;;  %v421_v17 = vadd.f32 %v414_v54, %v403_v43 }
  0x9f   : > { %v661_v33 = vadd.f32 1.0, %v653_v32  ;;  %v559_v39 = vadd.f32 -0.28449672, %v551_v36  ;;  %v520_v7 = vmul.f32 1.0614054, %v1523_v34  ;;  %v593_v21 = vsub.f32 0.0, %v1493_v1 }
  0xa0   : > { %v676_v2 = vadd.f32 %v668_v15, %v1245_v9  ;;  %v630_v59 = vsub.f32 1.0, %v622_v8  ;;  %v278_v9 = vmul.f32 %v1232_v4, %v1431_v52  ;;  %v428_v46 = vadd.f32 %v421_v17, %v373_v22 }
  0xa1   : > { %v669_v53 = vmul.f32 %v661_v33, %v1454_v19  ;;  %v567_v30 = vmul.f32 %v559_v39, %v1484_v0  ;;  %v528_v60 = vadd.f32 -1.4531521, %v520_v7  ;;  %v358_v58 = vmul.f32 %v1270_v23, %v267_v45  ;;  %v897_v31 = vpop.eup %896 }
  0xa2   : > { %684 = vst [vmem:[%s1528_s8] sm:$0xff] %v676_v2  ;;  %v646_v38 = vsub.f32 0.0, %v630_v59  ;;  %v296_v48 = vadd.f32 %v289_v37, %v278_v9  ;;  %v346_v27 = vadd.f32 %v338_v5, %v326_v56  ;;  %v497_v6 = vmul.f32 %v897_v31, %v481_v41 }
  0xa3   : > { %v677_v4 = vadd.f32 %v669_v53, %v1248_v10  ;;  %v575_v52 = vadd.f32 0.2548296, %v567_v30  ;;  %v536_v29 = vmul.f32 %v528_v60, %v1523_v34  ;;  %v1553_v10 = vadd.f32 %v1304_v49, %v428_v46  ;;  %v899_v62 = vpop.eup %898 }
  0xa4   : > { %v654_v19 = vsel %vm638_vm4, %v630_v59, %v646_v38  ;;  %v314_v28 = vadd.f32 %v307_v51, %v296_v48  ;;  %v505_v45 = vsub.f32 2.0, %v497_v6  ;;  %v366_v42 = vadd.f32 %v358_v58, %v346_v27 }
  0xa5   : > { %685 = vst [vmem:[%s1528_s8 + $0x8] sm:$0xff] %v677_v4  ;;  %v662_v25 = vadd.f32 1.0, %v654_v19  ;;  %v583_v11 = vmul.f32 %v575_v52, %v1484_v0  ;;  %v544_v14 = vadd.f32 1.4214138, %v536_v29  ;;  %v1557_v20 = vmul.f32 0.70710677, %v1553_v10 }
  0xa6   : > { %v601_v36 = vmul.f32 %v593_v21, %v1493_v1  ;;  %vm639_vm5 = vcmp.ge.f32.partialorder %v1395_v50, 0.0  ;;  %v513_v18 = vmul.f32 %v897_v31, %v505_v45  ;;  %v447_v32 = vmul.f32 0.5, %v1389_v44 }
  0xa7   : > { %v670_v3 = vmul.f32 %v662_v25, %v1460_v57  ;;  %v623_v15 = vmul.f32 %v895_v24, %v583_v11  ;;  %v552_v23 = vmul.f32 %v544_v14, %v1523_v34  ;;  %v466_v41 = vand.u32 2147483647, %v1557_v20 }
  0xa8   : > { %v374_v57 = vadd.f32 %v366_v42, %v314_v28  ;;  %v521_v33 = vmul.f32 1.0614054, %v513_v18  ;;  %v614_v1 = vmul.f32 1.442695, %v601_v36  ;;  %vm640_vm6 = vcmp.ge.f32.partialorder %v1443_v13, 0.0 }
  0xa9   : > { %v678_v0 = vadd.f32 %v670_v3, %v1257_v16  ;;  %v631_v35 = vsub.f32 1.0, %v623_v15  ;;  %v560_v22 = vadd.f32 -0.28449672, %v552_v23  ;;  %v474_v2 = vmul.f32 0.3275911, %v466_v41 }
  0xaa   : > { %v1568_v16 = vadd.f32 %v1304_v49, %v374_v57  ;;  %v529_v59 = vadd.f32 -1.4531521, %v521_v33  ;;  %v448_v52 = vmul.f32 0.5, %v1426_v47  ;;  %vm641_vm7 = vcmp.ge.f32.partialorder %v1481_v63, 0.0  ;;  %v1664_v63 = vld [vmem:[#allocation11_spill] sm:$0xff] }
  0xab   : > { %686 = vst [vmem:[%s1528_s8 + $0x10] sm:$0xff] %v678_v0  ;;  %v647_v24 = vsub.f32 0.0, %v631_v35  ;;  %v568_v8 = vmul.f32 %v560_v22, %v1523_v34  ;;  %v482_v43 = vadd.f32 1.0, %v474_v2  ;;  %v449_v0 = vmul.f32 0.5, %v1472_v61 }
  0xac   : > { %v1571_v7 = vmul.f32 0.70710677, %v1568_v16  ;;  %v537_v37 = vmul.f32 %v529_v59, %v513_v18  ;;  %vm642_vm8 = vcmp.ge.f32.partialorder %v1557_v20, 0.0 }
  0xad   : > { %v655_v39 = vsel %vm639_vm5, %v631_v35, %v647_v24  ;;  %v576_v50 = vadd.f32 0.2548296, %v568_v8  ;;  %900 = vrcp.f32 %v482_v43 }
  0xae   : > { %v663_v54 = vadd.f32 1.0, %v655_v39  ;;  %902 = vpow2.f32 %v614_v1  ;;  %v467_v53 = vand.u32 2147483647, %v1571_v7  ;;  %v545_v17 = vadd.f32 1.4214138, %v537_v37 }
  0xaf   : > { %v584_v44 = vmul.f32 %v576_v50, %v1523_v34  ;;  %vm643_vm9 = vcmp.ge.f32.partialorder %v1571_v7, 0.0 }
  0xb0   : > { %v671_v9 = vmul.f32 %v663_v54, %v447_v32  ;;  %v475_v51 = vmul.f32 0.3275911, %v467_v53  ;;  %v553_v60 = vmul.f32 %v545_v17, %v513_v18  ;;  %v595_v15 = vsub.f32 0.0, %v467_v53 }
  0xb1   : > { %v624_v30 = vmul.f32 %v899_v62, %v584_v44 }
  0xb2   : > { %v679_v49 = vadd.f32 %v671_v9, %v1291_v40  ;;  %v483_v48 = vadd.f32 1.0, %v475_v51  ;;  %v561_v4 = vadd.f32 -0.28449672, %v553_v60  ;;  %v594_v40 = vsub.f32 0.0, %v466_v41 }
  0xb3   : > { %v632_v38 = vsub.f32 1.0, %v624_v30  ;;  %v603_v22 = vmul.f32 %v595_v15, %v467_v53  ;;  %v450_v60 = vmul.f32 0.5, %v1553_v10 }
  0xb4   : > { %687 = vst [vmem:[%s1528_s8 + $0x18] sm:$0xff] %v679_v49  ;;  %904 = vrcp.f32 %v483_v48  ;;  %v569_v46 = vmul.f32 %v561_v4, %v513_v18  ;;  %v602_v27 = vmul.f32 %v594_v40, %v466_v41 }
  0xb5   : > { %v648_v56 = vsub.f32 0.0, %v632_v38  ;;  %v618_v33 = vmul.f32 1.442695, %v603_v22 }
  0xb6   : > { %v577_v29 = vadd.f32 0.2548296, %v569_v46  ;;  %v616_v3 = vmul.f32 1.442695, %v602_v27 }
  0xb7   : > { %v656_v34 = vsel %vm640_vm6, %v632_v38, %v648_v56  ;;  %v901_v5 = vpop.eup %900 }
  0xb8   : > { %v664_v19 = vadd.f32 1.0, %v656_v34  ;;  %v498_v21 = vmul.f32 %v901_v5, %v482_v43  ;;  %v903_v58 = vpop.eup %902  ;;  %v585_v25 = vmul.f32 %v577_v29, %v513_v18  ;;  %906 = vpow2.f32 %v616_v3 }
  0xb9   : > { %908 = vpow2.f32 %v618_v33 }
  0xba   : > { %v672_v31 = vmul.f32 %v664_v19, %v448_v52  ;;  %v506_v11 = vsub.f32 2.0, %v498_v21  ;;  %v625_v14 = vmul.f32 %v903_v58, %v585_v25  ;;  %v451_v19 = vmul.f32 0.5, %v1568_v16 }
  0xbc   : > { %v680_v13 = vadd.f32 %v672_v31, %v1335_v26  ;;  %v514_v6 = vmul.f32 %v901_v5, %v506_v11  ;;  %v633_v47 = vsub.f32 1.0, %v625_v14 }
  0xbe   : > { %688 = vst [vmem:[%s1528_s8 + $0x20] sm:$0xff] %v680_v13  ;;  %v522_v28 = vmul.f32 1.0614054, %v514_v6  ;;  %v905_v62 = vpop.eup %904  ;;  %v649_v23 = vsub.f32 0.0, %v633_v47 }
  0xbf   : > { %v499_v42 = vmul.f32 %v905_v62, %v483_v48 }
  0xc0   : > { %v530_v45 = vadd.f32 -1.4531521, %v522_v28  ;;  %v657_v35 = vsel %vm641_vm7, %v633_v47, %v649_v23 }
  0xc1   : > { %v507_v26 = vsub.f32 2.0, %v499_v42  ;;  %v665_v41 = vadd.f32 1.0, %v657_v35 }
  0xc2   : > { %v538_v36 = vmul.f32 %v530_v45, %v514_v6  ;;  %v907_v59 = vpop.eup %906 }
  0xc3   : > { %v515_v57 = vmul.f32 %v905_v62, %v507_v26  ;;  %v673_v24 = vmul.f32 %v665_v41, %v449_v0  ;;  %v909_v38 = vpop.eup %908 }
  0xc4   : > { %v546_v18 = vadd.f32 1.4214138, %v538_v36 }
  0xc5   : > { %v523_v32 = vmul.f32 1.0614054, %v515_v57  ;;  %v681_v8 = vadd.f32 %v673_v24, %v1664_v63 }
  0xc6   : > { %v554_v2 = vmul.f32 %v546_v18, %v514_v6 }
  0xc7   : > { %v531_v1 = vadd.f32 -1.4531521, %v523_v32  ;;  %689 = vst [vmem:[%s1528_s8 + $0x28] sm:$0xff] %v681_v8 }
  0xc8   : > { %v562_v39 = vadd.f32 -0.28449672, %v554_v2 }
  0xc9   : > { %v539_v61 = vmul.f32 %v531_v1, %v515_v57 }
  0xca   : > { %v570_v43 = vmul.f32 %v562_v39, %v514_v6 }
  0xcb   : > { %v547_v50 = vadd.f32 1.4214138, %v539_v61 }
  0xcc   : > { %v578_v54 = vadd.f32 0.2548296, %v570_v43 }
  0xcd   : > { %v555_v44 = vmul.f32 %v547_v50, %v515_v57 }
  0xce   : > { %v586_v9 = vmul.f32 %v578_v54, %v514_v6 }
  0xcf   : > { %v563_v53 = vadd.f32 -0.28449672, %v555_v44 }
  0xd0   : > { %v626_v37 = vmul.f32 %v907_v59, %v586_v9 }
  0xd1   : > { %v571_v30 = vmul.f32 %v563_v53, %v515_v57 }
  0xd2   : > { %v634_v49 = vsub.f32 1.0, %v626_v37 }
  0xd3   : > { %v579_v51 = vadd.f32 0.2548296, %v571_v30 }
  0xd4   : > { %v650_v17 = vsub.f32 0.0, %v634_v49 }
  0xd5   : > { %v587_v56 = vmul.f32 %v579_v51, %v515_v57 }
  0xd6   : > { %v658_v48 = vsel %vm642_vm8, %v634_v49, %v650_v17 }
  0xd7   : > { %v666_v4 = vadd.f32 1.0, %v658_v48  ;;  %v627_v52 = vmul.f32 %v909_v38, %v587_v56 }
  0xd9   : > { %v674_v34 = vmul.f32 %v666_v4, %v450_v60  ;;  %v635_v46 = vsub.f32 1.0, %v627_v52 }
  0xdb   : > { %v682_v5 = vadd.f32 %v674_v34, %v1410_v12  ;;  %v651_v20 = vsub.f32 0.0, %v635_v46 }
  0xdd   : > { %690 = vst [vmem:[%s1528_s8 + $0x30] sm:$0xff] %v682_v5  ;;  %v659_v40 = vsel %vm643_vm9, %v635_v46, %v651_v20 }
  0xde   : > { %v667_v10 = vadd.f32 1.0, %v659_v40 }
  0xe0   : > { %v675_v29 = vmul.f32 %v667_v10, %v451_v19 }
  0xe2   : > { %v683_v12 = vadd.f32 %v675_v29, %v1464_v55 }
  0xe4   : > { %691 = vst [vmem:[%s1528_s8 + $0x38] sm:$0xff] %v683_v12 }
  0xe5   : > { %981 = shalt.err (!%p978_p7)
}
  0xe6   : > { %s982_s30 = scalar_lea.hbm %s1598_s11, 1024  ;;  %s986_s10 = scalar_lea.hbm %s1647_s3, 2048 }
  0xe7   : > { %p983_p9 = scmp.ne.s32.totalorder %s1598_s11, %s982_s30  ;;  %p987_p5 = scmp.lt.u32.totalorder %s1598_s11, %s1647_s3 }
  0xe8   : > { %p988_p11 = scmp.lt.u32.totalorder %s986_s10, %s982_s30  ;;  %p990_p4 = scmp.lt.u32.totalorder %s982_s30, %s1598_s11 }
  0xe9   : > { %p984_p1 = pnand %p983_p9, %p1161_p12 }
  0xea   : > { %p989_p2 = por %p988_p11, %p987_p5 }
  0xeb   : > { %p985_p0 = pneg %p984_p1 }
  0xec   : > { %p991_p6 = por %p990_p4, %p989_p2 }
  0xee   : > { %p992_p8 = pnand %p991_p6, %p985_p0 }
  0xf0   : > { %995 = shalt.err (!%p992_p8)
}
  0xf1   : > { %s1045_s20 = smov 128   ;;  %s1046_s8 = smov 8  }
  0xf2   : > { %823 = dma.vmem_to_hbm [thread:$0]  (%p1161_p12), %s1593_s9, 1024, %s1598_s11, %s693_s27, %s1045_s20, %s1045_s20, %s1046_s8  }
  0xf3 PF: > { %s721_s4 = sand.u32 1, %s1026_s12   ;;  %p1665_p10 = scmp.ne.s32.totalorder %s1653_s19, 0 }
  0xf4   : > { %p1666_p13 = scmp.ge.s32.totalorder %s1038_s15, 2  ;;  %s722_s25 = scalar_lea.sflag [#allocation4], %s721_s4 }
  0xf6   : > { %p834_p3 = pnand %p1666_p13, %p1665_p10 }
  0xf8   : > { %1021 = dma.done.wait (!%p834_p3), %s722_s25, 1024  }
  0xf9   : > { %1023 = vsyncadd (!%p834_p3), %s722_s25, 4294966272  ;;  %p17_p7 = scmp.ge.s32.totalorder %s1123_s24, 4   ;;  %s1667_s12 = smov %s1030_s13 }
  0xfa   : > { %s1668_s13 = smov %s1034_s14  ;;  %s1669_s14 = smov %s1157_s17 }
  0xfb   : > { %s1670_s15 = smov %s1123_s24  ;;  %19 = sbr.rel (!%p17_p7) target bundleno = 6 (0x6), region = 81 }
 0x102   :  { %727 = vsyncpa [#allocation3], 1 }
 0x103   :  { %729 = vsyncpa [#allocation3 + $0x1], 1 }
 0x104   :  { %730 = vsyncpa [#allocation6], 1 }
 0x105   :  { %731 = vsyncpa [#allocation4], 1 }
 0x106   :  { %733 = vsyncpa [#allocation4 + $0x1], 1 }

</bundles_post_ra>
